<compile_context>
chip_gen: v7x
topology: tpu7x:2x2x1
jax: 0.10.0
libtpu: 0.0.40
codegen_flags: <defaults>
</compile_context>

<pallas_src>
import jax
import jax.numpy as jnp
from jax import lax
from jax.experimental import pallas as pl
from jax.experimental.pallas import tpu as pltpu

_LANE = 128
_C_TILE = 128  # channel sub-block for register-carried accumulation


def _tpu_vmem_budget():
    """Returns (max_block_bytes, base_vmem_limit, max_vmem_limit) per TPU gen."""
    try:
        info = pltpu.get_tpu_info()
        vmem_cap = int(getattr(info, "vmem_capacity_bytes", 0)) or (128 << 20)
    except Exception:
        vmem_cap = 64 << 20  # conservative fallback (v7x per-TC VMEM)
    if vmem_cap >= (96 << 20):          # v5e / v6e: 128 MiB VMEM
        return 12 << 20, 64 << 20, 100 << 20
    return 6 << 20, 40 << 20, 52 << 20  # v7x: 64 MiB VMEM per TC


def _make_kernel(C, Ch, hw, t_hw, acc_w, n_sub, n_hw, needs_mask, c_tile):
    # Only Python scalars are closed over -> nothing captured as a jax const.
    neg_inf = float("-inf")
    rem = hw - (n_hw - 1) * t_hw  # number of valid elements in the last block

    def kernel(x_ref, w1_ref, w2_ref, o_ref, sum_acc, max_acc):
        # x_ref: (1, C, t_hw)   w1_ref: (Ch, C)   w2_ref: (C, Ch)
        # o_ref: (1, 1, C)      sum_acc / max_acc: (C, acc_w) f32 scratch
        k = pl.program_id(1)

        @pl.when(k == 0)
        def _init():
            sum_acc[...] = jnp.zeros_like(sum_acc)
            max_acc[...] = jnp.full_like(max_acc, neg_inf)

        def accumulate(masked):
            # Static loop over channel sub-blocks bounds live vregs to
            # ~3 * c_tile / 8 regardless of C.
            for c0 in range(0, C, c_tile):
                cs = min(c_tile, C - c0)
                if masked:
                    # Hoisted once per channel tile (last grid step only).
                    lane = lax.broadcasted_iota(jnp.int32, (cs, acc_w), 1)

                def body(j, carry):
                    s, m = carry
                    start = j * acc_w
                    if not isinstance(start, int):
                        start = pl.multiple_of(start, acc_w)
                    chunk = x_ref[0, pl.ds(c0, cs), pl.ds(start, acc_w)]
                    chunk = chunk.astype(jnp.float32)
                    if masked:
                        valid = (lane + j * acc_w) < rem
                        s = s + jnp.where(valid, chunk, 0.0)
                        m = jnp.maximum(m, jnp.where(valid, chunk, neg_inf))
                    else:
                        s = s + chunk
                        m = jnp.maximum(m, chunk)
                    return s, m

                s = sum_acc[pl.ds(c0, cs), :]
                m = max_acc[pl.ds(c0, cs), :]
                if n_sub <= 8:
                    for j in range(n_sub):        # static, fully unrolled
                        s, m = body(j, (s, m))
                else:
                    s, m = lax.fori_loop(0, n_sub, body, (s, m), unroll=8)
                sum_acc[pl.ds(c0, cs), :] = s
                max_acc[pl.ds(c0, cs), :] = m

        if needs_mask:
            # Steady-state blocks take the cheap unmasked path; only the last
            # HW block pays for the mask.
            @pl.when(k < n_hw - 1)
            def _steady():
                accumulate(False)

            @pl.when(k == n_hw - 1)
            def _tail():
                accumulate(True)
        else:
            accumulate(False)

        # ---- finalize once per batch row: XLU reduce + fused MLP + sigmoid ----
        @pl.when(k == n_hw - 1)
        def _finalize():
            avg_row = jnp.sum(sum_acc[...], axis=-1) / float(hw)   # (C,)
            max_row = jnp.max(max_acc[...], axis=-1)               # (C,)
            pooled = jnp.concatenate(
                [avg_row[None, :], max_row[None, :]], axis=0)      # (2, C)
            w1 = w1_ref[...].astype(jnp.float32)                   # (Ch, C)
            w2 = w2_ref[...].astype(jnp.float32)                   # (C, Ch)
            h = jnp.maximum(
                lax.dot_general(pooled, w1, (((1,), (1,)), ((), ())),
                                preferred_element_type=jnp.float32),
                0.0)                                               # (2, Ch)
            y2 = lax.dot_general(h, w2, (((1,), (1,)), ((), ())),
                                 preferred_element_type=jnp.float32)  # (2, C)
            y = jax.nn.sigmoid(y2[0] + y2[1])                      # (C,)
            o_ref[...] = y[None, None, :].astype(o_ref.dtype)      # lane-dense

    return kernel


def channel_attention(x, w1, w2, *, block_hw=None, max_block_bytes=None):
    """CBAM channel attention.

    x:  (B, C, H, W) NCHW.
    w1: (Ch, C)  == conv1.weight[:, :, 0, 0]   (Ch = C // ratio)
    w2: (C, Ch)  == conv2.weight[:, :, 0, 0]
    Returns sigmoid attention map of shape (B, C, 1, 1).
    """
    B, C, H, W = x.shape
    Ch = w1.shape[0]
    assert w1.shape == (Ch, C) and w2.shape == (C, Ch)
    hw = H * W
    itemsize = jnp.dtype(x.dtype).itemsize

    auto_block_bytes, base_vmem_limit, max_vmem_limit = _tpu_vmem_budget()
    if max_block_bytes is None:
        max_block_bytes = auto_block_bytes

    # ---- HW tile: multiple of 128 lanes, bounded per-block VMEM bytes ----
    if block_hw is not None:
        t_hw = int(block_hw)
        if t_hw >= _LANE:
            assert t_hw % _LANE == 0 and t_hw <= hw
        else:
            assert t_hw == hw
    elif hw >= _LANE:
        cap = max(_LANE, (max_block_bytes // (C * itemsize)) // _LANE * _LANE)
        t_hw = int(min(cap, (hw // _LANE) * _LANE))
    else:
        t_hw = hw  # tiny spatial extent: one un-tiled block
    n_hw = pl.cdiv(hw, t_hw)
    acc_w = _LANE if t_hw >= _LANE else t_hw
    n_sub = t_hw // acc_w
    needs_mask = (hw % t_hw) != 0
    c_tile = min(C, _C_TILE)

    # VMEM limit: generation-aware base, raised if a forced/huge-C block needs it.
    block_bytes = C * t_hw * itemsize
    vmem_limit = int(min(max_vmem_limit,
                         max(base_vmem_limit, 2 * block_bytes + (8 << 20))))

    x3 = x.reshape(B, C, hw)
    kernel = _make_kernel(C, Ch, hw, t_hw, acc_w, n_sub, n_hw, needs_mask, c_tile)

    cost = pl.CostEstimate(
        flops=int(2 * B * C * hw + 8 * B * C * Ch + 4 * B * C),
        transcendentals=int(B * C),
        bytes_accessed=int(x3.size * itemsize
                           + (w1.size + w2.size) * jnp.dtype(w1.dtype).itemsize
                           + B * C * itemsize),
    )

    out = pl.pallas_call(
        kernel,
        out_shape=jax.ShapeDtypeStruct((B, 1, C), x.dtype),
        grid_spec=pltpu.PrefetchScalarGridSpec(
            num_scalar_prefetch=0,
            grid=(B, n_hw),
            in_specs=[
                pl.BlockSpec((1, C, t_hw), lambda b, k: (b, 0, k)),
                pl.BlockSpec((Ch, C), lambda b, k: (0, 0)),   # weights resident
                pl.BlockSpec((C, Ch), lambda b, k: (0, 0)),
            ],
            out_specs=pl.BlockSpec((1, 1, C), lambda b, k: (b, 0, 0)),
            scratch_shapes=[
                pltpu.VMEM((C, acc_w), jnp.float32),   # running sum
                pltpu.VMEM((C, acc_w), jnp.float32),   # running max
            ],
        ),
        compiler_params=pltpu.CompilerParams(
            dimension_semantics=("parallel", "arbitrary"),
            vmem_limit_bytes=vmem_limit,
        ),
        cost_estimate=cost,
    )(x3, w1, w2)
    return out.reshape(B, C, 1, 1)


def reference(x, w1, w2):
    # Pure-JAX reference mirroring the PyTorch module.
    avg = jnp.mean(x, axis=(2, 3))                     # (B, C)
    mx = jnp.max(x, axis=(2, 3))                       # (B, C)

    def mlp(v):
        h = jnp.maximum(v @ w1.T, 0.0)                 # (B, Ch)
        return h @ w2.T                                # (B, C)

    return jax.nn.sigmoid(mlp(avg) + mlp(mx))[:, :, None, None]


if __name__ == "__main__":
    B, C, ratio = 2, 32, 16
    Ch = C // ratio                                    # hidden = 2

    key = jax.random.PRNGKey(0)
    kx, k1, k2, kx2 = jax.random.split(key, 4)
    w1 = jax.random.normal(k1, (Ch, C), dtype=jnp.float32) * (1.0 / (C ** 0.5))
    w2 = jax.random.normal(k2, (C, Ch), dtype=jnp.float32) * (1.0 / (Ch ** 0.5))

    # 1) default auto tile (single HW block per batch row)
    x = jax.random.normal(kx, (B, C, 16, 16), dtype=jnp.float32)
    out = channel_attention(x, w1, w2)
    jax.block_until_ready(out)
    ref = reference(x, w1, w2)
    assert out.shape == (B, C, 1, 1)
    assert jnp.allclose(out, ref, atol=1e-5, rtol=1e-5), "mismatch (auto tile)"

    # 2) forced small HW tile -> multi-step grid accumulation path
    out2 = channel_attention(x, w1, w2, block_hw=128)
    jax.block_until_ready(out2)
    assert jnp.allclose(out2, ref, atol=1e-5, rtol=1e-5), "mismatch (tiled HW)"

    # 3) HW not a multiple of the tile -> masked remainder path (last step only)
    x_odd = jax.random.normal(kx2, (B, C, 20, 10), dtype=jnp.float32)
    out3 = channel_attention(x_odd, w1, w2)
    jax.block_until_ready(out3)
    ref3 = reference(x_odd, w1, w2)
    assert jnp.allclose(out3, ref3, atol=1e-5, rtol=1e-5), "mismatch (masked tail)"

    print("KERNEL_OK")
</pallas_src>

<mosaic_0001>
module attributes {stable_mosaic.version = 11 : i64} {
  func.func @kernel(%arg0: i32, %arg1: i32, %arg2: memref<1x32x256xf32, #tpu.memory_space<vmem>>, %arg3: memref<2x32xf32, #tpu.memory_space<vmem>>, %arg4: memref<32x2xf32, #tpu.memory_space<vmem>>, %arg5: memref<1x1x32xf32, #tpu.memory_space<vmem>>, %arg6: memref<32x128xf32, #tpu.memory_space<vmem>>, %arg7: memref<32x128xf32, #tpu.memory_space<vmem>>) attributes {dimension_semantics = [#tpu.dimension_semantics<parallel>, #tpu.dimension_semantics<arbitrary>], iteration_bounds = array<i64: 2, 1>, scalar_prefetch = 0 : i64, scratch_operands = 2 : i64, tpu.core_type = #tpu.core_type<tc>, window_params = [{transform_indices = @transform_0, window_bounds = array<i64: 1, 32, 256>}, {pipeline_mode = #tpu.pipeline_mode<synchronous>, transform_indices = @transform_1, window_bounds = array<i64: 2, 32>}, {pipeline_mode = #tpu.pipeline_mode<synchronous>, transform_indices = @transform_2, window_bounds = array<i64: 32, 2>}, {transform_indices = @transform_3, window_bounds = array<i64: 1, 1, 32>}]} {
    %c0_i32 = arith.constant 0 : i32
    %0 = arith.cmpi eq, %arg1, %c0_i32 : i32
    %1 = arith.extui %0 : i1 to i32
    %c0_i32_0 = arith.constant 0 : i32
    %2 = arith.cmpi ne, %1, %c0_i32_0 : i32
    scf.if %2 {
      %cst = arith.constant 0.000000e+00 : f32
      %18 = vector.broadcast %cst : f32 to vector<32x128xf32>
      %c0_15 = arith.constant 0 : index
      %c0_16 = arith.constant 0 : index
      %19 = vector.load %arg6[%c0_15, %c0_16] : memref<32x128xf32, #tpu.memory_space<vmem>>, vector<32x128xf32>
      tpu.vector_store %arg6[%c0_15, %c0_16], %18 {strides = array<i32>} : memref<32x128xf32, #tpu.memory_space<vmem>>, vector<32x128xf32>,
      %cst_17 = arith.constant 0xFF800000 : f32
      %20 = vector.broadcast %cst_17 : f32 to vector<32x128xf32>
      %c0_18 = arith.constant 0 : index
      %c0_19 = arith.constant 0 : index
      %21 = vector.load %arg7[%c0_18, %c0_19] : memref<32x128xf32, #tpu.memory_space<vmem>>, vector<32x128xf32>
      tpu.vector_store %arg7[%c0_18, %c0_19], %20 {strides = array<i32>} : memref<32x128xf32, #tpu.memory_space<vmem>>, vector<32x128xf32>,
    } else {
    }
    %c0 = arith.constant 0 : index
    %c0_1 = arith.constant 0 : index
    %3 = vector.load %arg6[%c0, %c0_1] : memref<32x128xf32, #tpu.memory_space<vmem>>, vector<32x128xf32>
    %c0_2 = arith.constant 0 : index
    %c0_3 = arith.constant 0 : index
    %4 = vector.load %arg7[%c0_2, %c0_3] : memref<32x128xf32, #tpu.memory_space<vmem>>, vector<32x128xf32>
    %c0_4 = arith.constant 0 : index
    %c0_5 = arith.constant 0 : index
    %c0_6 = arith.constant 0 : index
    %5 = vector.load %arg2[%c0_4, %c0_5, %c0_6] : memref<1x32x256xf32, #tpu.memory_space<vmem>>, vector<1x32x128xf32>
    %6 = vector.shape_cast %5 : vector<1x32x128xf32> to vector<32x128xf32>
    %7 = arith.addf %3, %6 : vector<32x128xf32>
    %8 = arith.maximumf %4, %6 : vector<32x128xf32>
    %c0_7 = arith.constant 0 : index
    %c0_8 = arith.constant 0 : index
    %c128 = arith.constant 128 : index
    %9 = vector.load %arg2[%c0_7, %c0_8, %c128] : memref<1x32x256xf32, #tpu.memory_space<vmem>>, vector<1x32x128xf32>
    %10 = vector.shape_cast %9 : vector<1x32x128xf32> to vector<32x128xf32>
    %11 = arith.addf %7, %10 : vector<32x128xf32>
    %12 = arith.maximumf %8, %10 : vector<32x128xf32>
    %c0_9 = arith.constant 0 : index
    %c0_10 = arith.constant 0 : index
    %13 = vector.load %arg6[%c0_9, %c0_10] : memref<32x128xf32, #tpu.memory_space<vmem>>, vector<32x128xf32>
    tpu.vector_store %arg6[%c0_9, %c0_10], %11 {strides = array<i32>} : memref<32x128xf32, #tpu.memory_space<vmem>>, vector<32x128xf32>,
    %c0_11 = arith.constant 0 : index
    %c0_12 = arith.constant 0 : index
    %14 = vector.load %arg7[%c0_11, %c0_12] : memref<32x128xf32, #tpu.memory_space<vmem>>, vector<32x128xf32>
    tpu.vector_store %arg7[%c0_11, %c0_12], %12 {strides = array<i32>} : memref<32x128xf32, #tpu.memory_space<vmem>>, vector<32x128xf32>,
    %c0_i32_13 = arith.constant 0 : i32
    %15 = arith.cmpi eq, %arg1, %c0_i32_13 : i32
    %16 = arith.extui %15 : i1 to i32
    %c0_i32_14 = arith.constant 0 : i32
    %17 = arith.cmpi ne, %16, %c0_i32_14 : i32
    scf.if %17 {
      %c0_15 = arith.constant 0 : index
      %c0_16 = arith.constant 0 : index
      %18 = vector.load %arg6[%c0_15, %c0_16] : memref<32x128xf32, #tpu.memory_space<vmem>>, vector<32x128xf32>
      %cst = arith.constant dense<0.000000e+00> : vector<32xf32>
      %19 = vector.multi_reduction <add>, %18, %cst [1] : vector<32x128xf32> to vector<32xf32>
      %cst_17 = arith.constant 2.560000e+02 : f32
      %20 = vector.broadcast %cst_17 : f32 to vector<32xf32>
      %21 = arith.divf %19, %20 : vector<32xf32>
      %c0_18 = arith.constant 0 : index
      %c0_19 = arith.constant 0 : index
      %22 = vector.load %arg7[%c0_18, %c0_19] : memref<32x128xf32, #tpu.memory_space<vmem>>, vector<32x128xf32>
      %cst_20 = arith.constant dense<0xFF800000> : vector<32xf32>
      %23 = vector.multi_reduction <maximumf>, %22, %cst_20 [1] : vector<32x128xf32> to vector<32xf32>
      %24 = vector.shape_cast %21 : vector<32xf32> to vector<1x32xf32>
      %25 = vector.shape_cast %23 : vector<32xf32> to vector<1x32xf32>
      %26 = tpu.concatenate %24, %25 in 0 : vector<1x32xf32>, vector<1x32xf32> -> vector<2x32xf32>
      %c0_21 = arith.constant 0 : index
      %c0_22 = arith.constant 0 : index
      %27 = vector.load %arg3[%c0_21, %c0_22] : memref<2x32xf32, #tpu.memory_space<vmem>>, vector<2x32xf32>
      %c0_23 = arith.constant 0 : index
      %c0_24 = arith.constant 0 : index
      %28 = vector.load %arg4[%c0_23, %c0_24] : memref<32x2xf32, #tpu.memory_space<vmem>>, vector<32x2xf32>
      %cst_25 = arith.constant dense<0.000000e+00> : vector<2x2xf32>
      %29 = tpu.matmul %26, %27, %cst_25 {dimension_numbers = #tpu.dot_dimension_numbers<[1], [1], [0], [0], [0, 0, 1, 0], [], []>} : vector<2x32xf32>, vector<2x32xf32>, vector<2x2xf32> -> vector<2x2xf32>
      %cst_26 = arith.constant 0.000000e+00 : f32
      %30 = vector.broadcast %cst_26 : f32 to vector<2x2xf32>
      %31 = arith.maximumf %29, %30 : vector<2x2xf32>
      %cst_27 = arith.constant dense<0.000000e+00> : vector<2x32xf32>
      %32 = tpu.matmul %31, %28, %cst_27 {dimension_numbers = #tpu.dot_dimension_numbers<[1], [1], [0], [0], [0, 0, 1, 0], [], []>} : vector<2x2xf32>, vector<32x2xf32>, vector<2x32xf32> -> vector<2x32xf32>
      %33 = vector.extract_strided_slice %32 {offsets = [0, 0], sizes = [1, 32], strides = [1, 1]} : vector<2x32xf32> to vector<1x32xf32>
      %34 = vector.shape_cast %33 : vector<1x32xf32> to vector<32xf32>
      %35 = vector.extract_strided_slice %32 {offsets = [1, 0], sizes = [1, 32], strides = [1, 1]} : vector<2x32xf32> to vector<1x32xf32>
      %36 = vector.shape_cast %35 : vector<1x32xf32> to vector<32xf32>
      %37 = arith.addf %34, %36 : vector<32xf32>
      %38 = arith.negf %37 : vector<32xf32>
      %39 = math.exp %38 : vector<32xf32>
      %cst_28 = arith.constant 1.000000e+00 : f32
      %40 = vector.broadcast %cst_28 : f32 to vector<32xf32>
      %41 = arith.addf %40, %39 : vector<32xf32>
      %42 = arith.divf %40, %41 : vector<32xf32>
      %43 = vector.shape_cast %42 : vector<32xf32> to vector<1x1x32xf32>
      %c0_29 = arith.constant 0 : index
      %c0_30 = arith.constant 0 : index
      %c0_31 = arith.constant 0 : index
      %44 = vector.load %arg5[%c0_29, %c0_30, %c0_31] : memref<1x1x32xf32, #tpu.memory_space<vmem>>, vector<1x1x32xf32>
      tpu.vector_store %arg5[%c0_29, %c0_30, %c0_31], %43 {strides = array<i32>} : memref<1x1x32xf32, #tpu.memory_space<vmem>>, vector<1x1x32xf32>,
    } else {
    }
    return
  }
  func.func @transform_0(%arg0: i32, %arg1: i32) -> (i32, i32, i32) {
    %c0_i32 = arith.constant 0 : i32
    %c0_i32_0 = arith.constant 0 : i32
    return %arg0, %c0_i32, %arg1 : i32, i32, i32
  }
  func.func @transform_1(%arg0: i32, %arg1: i32) -> (i32, i32) {
    %c0_i32 = arith.constant 0 : i32
    %c0_i32_0 = arith.constant 0 : i32
    %c0_i32_1 = arith.constant 0 : i32
    return %c0_i32, %c0_i32_0 : i32, i32
  }
  func.func @transform_2(%arg0: i32, %arg1: i32) -> (i32, i32) {
    %c0_i32 = arith.constant 0 : i32
    %c0_i32_0 = arith.constant 0 : i32
    %c0_i32_1 = arith.constant 0 : i32
    return %c0_i32, %c0_i32_0 : i32, i32
  }
  func.func @transform_3(%arg0: i32, %arg1: i32) -> (i32, i32, i32) {
    %c0_i32 = arith.constant 0 : i32
    %c0_i32_0 = arith.constant 0 : i32
    %c0_i32_1 = arith.constant 0 : i32
    return %arg0, %c0_i32, %c0_i32_0 : i32, i32, i32
  }
}

</mosaic_0001>

<bundles_post_ra>
// kernel: tpu_custom_call.1
= control target key start
LH: loop header
LB: loop body
LE: loop exit
PB: predicated region body
PF: predicated region fallthrough
CT: control target
= control target key end

     0   :  { %8 = vsyncpa [#allocation5], 0  ;;  %s1078_s0 = inlined_call_operand.hbm [shape: f32[2,32,256], index: 0, kind: input, shape index: {}]   ;;  %s1079_s1 = inlined_call_operand.vmem [shape: f32[2,32], index: 1, kind: input, shape index: {}]   ;;  %s1080_s2 = inlined_call_operand.vmem [shape: f32[32,2], index: 2, kind: input, shape index: {}]   ;;  %s1081_s3 = inlined_call_operand.hbm [shape: f32[2,1,32], index: 3, kind: output, shape index: {}]  }
   0x1   :  { %10 = vsyncpa [#allocation5 + $0x1], 0 }
   0x2   :  { %11 = vsyncpa [#allocation6], 0 }
   0x3   :  { %13 = vsyncpa [#allocation6 + $0x1], 0  ;;  %s882_s12 = smov 0   ;;  %s884_s13 = smov 0  }
   0x4   :  { %s886_s14 = smov 0   ;;  %s888_s15 = smov 0  }
   0x5   :  { %s890_s16 = smov 0   ;;  %s892_s17 = smov 0  }
   0x6 LB: > { %s618_s18 = sadd.s32 4294967295, %s853_s17   ;;  %s619_s19 = sadd.s32 4294967294, %s853_s17   ;;  %s853_s17 = sphi %s892_s17, %s19_s17   ;;  %s849_s16 = sphi %s890_s16, %s1096_s16   ;;  %s845_s15 = sphi %s888_s15, %s1095_s15   ;;  %s841_s14 = sphi %s886_s14, %s1094_s14   ;;  %s837_s13 = sphi %s884_s13, %s1093_s13   ;;  %s833_s12 = sphi %s882_s12, %s1092_s12  }
   0x7   : > { %s31_s20 = sadd.s32 1, %s849_s16  ;;  %s40_s21 = sadd.s32 1, %s841_s14 }
   0x8   : > { %p33_p0 = scmp.ge.s32.totalorder %s31_s20, 2  ;;  %p47_p1 = scmp.ne.s32.totalorder %s841_s14, %s837_s13 }
   0x9   : > { %p48_p2 = scmp.eq.s32.totalorder %s853_s17, 0  ;;  %p53_p3 = scmp.ne.s32.totalorder %s837_s13, %s833_s12 }
   0xa   : > { %s1098_s20 = smov (%p33_p0, %s31_s20), 0  ;;  %p54_p5 = scmp.eq.s32.totalorder %s618_s18, 0 }
   0xb   : > { %p923_p4 = por %p48_p2, %p47_p1  ;;  %s35_s23 = ssub.s32 %s849_s16, %s1098_s20 }
   0xc   : > { %p119_p6 = scmp.eq.s32.totalorder %s618_s18, 1  ;;  %p38_p7 = scmp.eq.s32.totalorder %s35_s23, 0 }
   0xd   : > { %p929_p8 = por %p54_p5, %p53_p3  ;;  %p125_p10 = scmp.eq.s32.totalorder %s619_s19, 1 }
   0xe   : > { %p933_p9 = por %p119_p6, %p47_p1  ;;  %p682_p13 = scmp.lt.s32.totalorder %s853_s17, 2 }
   0xf   : > { %s938_s26 = scalar_select %p38_p7, %s841_s14, %s40_s21  }
  0x10   : > { %s1085_s25 = scalar_select %p933_p9, 1, 0 }
  0x11   : > { %p940_p11 = por %p125_p10, %p53_p3  ;;  %s151_s28 = sand.u32 1, %s841_s14  }
  0x12   : > { %s622_s29 = sshll.u32 %s151_s28, 6  ;;  %s638_s30 = sshll.u32 %s849_s16, 10 }
  0x13   : > { %s1086_s27 = scalar_select %p940_p11, 1, 0 }
  0x14   : > { %s951_s6 = scalar_lea.hbm %s1078_s0, %s638_s30  ;;  %s155_s7 = scalar_lea.vmem [#allocation4], %s622_s29 }
  0x15   : > { %s164_s8 = sshll.u32 %s155_s7, 4  ;;  %p957_p0 = pnand %p682_p13, %p923_p4  ;;  %s953_s8 = int_to_ptr.vmem [resolvable:$true] %s164_s8 }
  0x16   : > { %s962_s10 = scalar_lea.sflag [#allocation5], %s151_s28  ;;  %s741_s11 = scalar_lea.hbm %s951_s6, 1024 }
  0x17   : > { %p742_p2 = scmp.ne.s32.totalorder %s951_s6, %s741_s11  ;;  %p743_p3 = pneg %p957_p0 }
  0x18   : > { %s746_s21 = scalar_lea.hbm %s1078_s0, 2048  ;;  %p747_p4 = scmp.lt.u32.totalorder %s951_s6, %s1078_s0 }
  0x19   : > { %p744_p5 = pnand %p743_p3, %p742_p2  ;;  %p748_p7 = scmp.lt.u32.totalorder %s746_s21, %s741_s11 }
  0x1a   : > { %p750_p13 = scmp.lt.u32.totalorder %s741_s11, %s951_s6 }
  0x1b   : > { %p745_p6 = pneg %p744_p5  ;;  %p749_p10 = por %p748_p7, %p747_p4 }
  0x1d   : > { %p751_p12 = por %p750_p13, %p749_p10 }
  0x1f   : > { %p752_p1 = pnand %p751_p12, %p745_p6 }
  0x21   : > { %755 = shalt.err (!%p752_p1)
}
  0x22   : > { %s756_s28 = scalar_lea.vmem %s953_s8, 1024  ;;  %s855_s29 = smov [#allocation4]  }
  0x23   : > { %p757_p2 = scmp.ne.s32.totalorder %s953_s8, %s756_s28  ;;  %s761_s30 = sshll.u32 %s855_s29, 4  ;;  %s762_s30 = int_to_ptr.vmem [resolvable:$false] %s761_s30 }
  0x24   : > { %s763_s4 = scalar_lea.vmem %s762_s30, 2048  ;;  %p764_p9 = scmp.lt.s32.totalorder %s953_s8, %s762_s30 }
  0x25   : > { %p759_p5 = pnand %p757_p2, %p743_p3  ;;  %p765_p4 = scmp.lt.s32.totalorder %s763_s4, %s756_s28 }
  0x27   : > { %p760_p11 = pneg %p759_p5  ;;  %p766_p7 = por %p765_p4, %p764_p9 }
  0x29   : > { %p767_p10 = pnand %p766_p7, %p760_p11 }
  0x2b   : > { %770 = shalt.err (!%p767_p10)
}
  0x2c   : > { %s856_s5 = smov 256   ;;  %s857_s7 = smov 16  }
  0x2d   : > { %677 = dma.hbm_to_vmem [thread:$0]  (!%p957_p0), %s951_s6, 1024, %s953_s8, %s962_s10, %s856_s5, %s856_s5, %s857_s7  }
  0x2e   : > { %p172_p12 = scmp.lt.s32.totalorder %s853_s17, 3  ;;  %p1088_p1 = scmp.ge.s32.totalorder %s853_s17, 1 }
  0x30   : > { %p173_p3 = pnand %p1088_p1, %p172_p12 }
  0x31   : > { %s994_s11 = sand.u32 (!%p173_p3), 1, %s837_s13  }
  0x32   : > { %176 = sbr.rel (%p173_p3) target bundleno = 691 (0x2b3), region = 32  ;;  %s626_s18 = sshll.u32 (!%p173_p3), %s994_s11, 6 }
  0x33   : > { %s179_s19 = scalar_lea.sflag (!%p173_p3), [#allocation5], %s994_s11  ;;  %s182_s21 = scalar_lea.vmem (!%p173_p3), [#allocation4], %s626_s18 }
  0x39   : > { %824 = dma.done.wait (%p929_p8), %s179_s19, 1024  }
  0x3a   : > { %826 = vsyncadd (%p929_p8), %s179_s19, 4294966272  ;;  %v227_v0 = vld [vmem:[%s182_s21 + $0x20] sm:$0xff]  ;;  %v239_v1 = vld [vmem:[%s182_s21 + $0x28] sm:$0xff]  ;;  %v858_v16 = vmov 0.0   ;;  %vm352_vm0 = vcmask 261120   ;;  %vm859_vm1 = vmmov 0   ;;  %v293_v25 = vlaneseq }
  0x3b   : > { %v225_v2 = vld [vmem:[%s182_s21] sm:$0xff]  ;;  %v243_v3 = vadd.f32 %v239_v1, %v227_v0  ;;  %v237_v4 = vld [vmem:[%s182_s21 + $0x8] sm:$0xff]  ;;  %v228_v5 = vld [vmem:[%s182_s21 + $0x30] sm:$0xff]  ;;  %v247_v15 = vmax.f32 %v227_v0, %v239_v1  ;;  %646 = vmatprep.subr.mxu0 %v858_v16  ;;  %648 = vmatprep.mubr.msk.f32.mxu0 %vm859_vm1, %v858_v16  ;;  %vm430_vm2 = vcmask 15360   ;;  %v860_v20 = vmov 0.0|0.0   ;;  %s635_s4 = sshll.u32 %s845_s15, 4 }
  0x3c   : > { %v240_v6 = vld [vmem:[%s182_s21 + $0x38] sm:$0xff]  ;;  %v241_v7 = vadd.f32 %v237_v4, %v225_v2  ;;  %v226_v8 = vld [vmem:[%s182_s21 + $0x10] sm:$0xff]  ;;  %v245_v13 = vmax.f32 %v225_v2, %v237_v4  ;;  %v347_v17 = vld [vmem:[%s1079_s1] sm:$0x3]  ;;  %659 = vmatprep.mubr.msk.f32.mxu1 %vm859_vm1, %v858_v16  ;;  %662 = vmatprep.subr.bf16.mxu1 %v860_v20  ;;  %v294_v26 = vand.u32 127, %v293_v25  ;;  %v296_v29 = vshrl.u32 %v293_v25, 7 }
  0x3d   : > { %v238_v9 = vld [vmem:[%s182_s21 + $0x18] sm:$0xff]  ;;  %268 = vadd.xlane.f32.xlu1 %v243_v3  ;;  %v244_v10 = vadd.f32 %v240_v6, %v228_v5  ;;  %v248_v14 = vmax.f32 %v228_v5, %v240_v6  ;;  %647 = vmatpush3.xpose.msk.msra.mxu0 %vm352_vm0, %v347_v17  ;;  %v348_v18 = vld [vmem:[%s1080_s2] sm:$0xff]  ;;  %v349_v19 = vld [vmem:[%s1080_s2 + $0x8] sm:$0xff]  ;;  %vm304_vm4 = vcmask 130112   ;;  %vm311_vm5 = vcmask 195712   ;;  %s203_s5 = scalar_lea.vmem [#allocation7], %s994_s11  ;;  %s1029_s21 = scalar_lea.hbm %s1081_s3, %s635_s4 }
  0x3e   : > { %264 = vadd.xlane.f32.xlu0 %v241_v7  ;;  %v242_v11 = vadd.f32 %v238_v9, %v226_v8  ;;  %v246_v12 = vmax.f32 %v226_v8, %v238_v9  ;;  %v663_v21 = vpack.c.bf16 %v349_v19, %v348_v18  ;;  %vm664_vm3 = vmpackc.low %vm430_vm2, %vm430_vm2  ;;  %v350_v22 = vld [vmem:[%s1080_s2 + $0x10] sm:$0xff]  ;;  %v351_v23 = vld [vmem:[%s1080_s2 + $0x18] sm:$0xff]  ;;  %v299_v28 = vadd.s32 4294967288, %v294_v26  ;;  %s541_s7 = sshll.u32 %s203_s5, 4  ;;  %s529_s24 = scalar_lea.sflag [#allocation6], %s994_s11  ;;  %s1031_s7 = int_to_ptr.vmem [resolvable:$true] %s541_s7 }
  0x3f   : > { %v667_v24 = vpack.c.bf16 %v351_v23, %v350_v22  ;;  %v306_v31 = vadd.s32 4294967280, %v294_v26  ;;  %v297_v34 = vsub.s32 %v294_v26, %v296_v29  ;;  %v313_v36 = vadd.s32 4294967272, %v294_v26  ;;  %s771_s6 = scalar_lea.vmem %s1031_s7, 16  ;;  %p1089_p9 = scmp.ne.s32.totalorder %s1085_s25, 0 }
  0x40   : > { %665 = vmatpush3.bf16.xpose.msk.msra.mxu1 %vm664_vm3, %v663_v21  ;;  %v302_v33 = vsub.s32 %v299_v28, %v296_v29  ;;  %vm318_vm6 = vcmask 261312   ;;  %vm345_vm7 = vcmask 1040384   ;;  %vm526_vm8 = vcmask 253952   ;;  %p772_p8 = scmp.ne.s32.totalorder %s1031_s7, %s771_s6  ;;  %s861_s15 = smov [#allocation7]  }
  0x41   : > { %270 = vadd.xlane.f32.xlu1 %v244_v10  ;;  %666 = vmatprep.subr.bf16.mxu1 %v860_v20  ;;  %v309_v39 = vsub.s32 %v306_v31, %v296_v29  ;;  %v316_v44 = vsub.s32 %v313_v36, %v296_v29  ;;  %s775_s8 = sshll.u32 %s861_s15, 4  ;;  %s776_s8 = int_to_ptr.vmem [resolvable:$false] %s775_s8 }
  0x42   : > { %266 = vadd.xlane.f32.xlu0 %v242_v11  ;;  %p773_p11 = pnand %p772_p8, %p1089_p9  ;;  %s777_s9 = scalar_lea.vmem %s776_s8, 32 }
  0x43   : > { %p778_p6 = scmp.lt.s32.totalorder %s1031_s7, %s776_s8  ;;  %p779_p13 = scmp.lt.s32.totalorder %s777_s9, %s771_s6 }
  0x44   : > { %p774_p0 = pneg %p773_p11 }
  0x45   : > { %283 = vmax.xlane.f32.xlu1 %v246_v12  ;;  %p780_p2 = por %p779_p13, %p778_p6 }
  0x46   : > { %281 = vmax.xlane.f32.xlu0 %v245_v13 }
  0x47   : > { %p781_p5 = pnand %p780_p2, %p774_p0 }
  0x48   : > { %669 = vmatpush3.bf16.xpose.msk.msra.mxu1 %vm664_vm3, %v667_v24 }
  0x49   : > { %287 = vmax.xlane.f32.xlu1 %v248_v14 }
  0x4a   : > { %285 = vmax.xlane.f32.xlu0 %v247_v15 }
  0xca   : > { %v269_v27 = vpop.xlane.xlu1 %268 }
  0xcb   : > { %v265_v30 = vpop.xlane.xlu0 %264  ;;  %v275_v40 = vmul.f32 0.00390625, %v269_v27 }
  0xcc   : > { %v273_v35 = vmul.f32 0.00390625, %v265_v30 }
  0xcd   : > { %v310_v50 = vrot.slane %v275_v40, %v309_v39 }
  0xce   : > { %v271_v32 = vpop.xlane.xlu1 %270  ;;  %v298_v43 = vrot.slane %v273_v35, %v297_v34 }
  0xcf   : > { %v267_v37 = vpop.xlane.xlu0 %266  ;;  %v276_v45 = vmul.f32 0.00390625, %v271_v32 }
  0xd0   : > { %v274_v38 = vmul.f32 0.00390625, %v267_v37 }
  0xd1   : > { %v317_v52 = vrot.slane %v276_v45, %v316_v44 }
  0xd2   : > { %v303_v41 = vrot.slane %v274_v38, %v302_v33  ;;  %v284_v42 = vpop.xlane.xlu1 %283 }
  0xd3   : > { %v282_v46 = vpop.xlane.xlu0 %281  ;;  %v332_v48 = vrot.slane %v284_v42, %v302_v33 }
  0xd4   : > { %v305_v47 = vsel %vm304_vm4, %v303_v41, %v298_v43  ;;  %v328_v49 = vrot.slane %v282_v46, %v297_v34 }
  0xd5   : > { %v312_v56 = vsel %vm311_vm5, %v310_v50, %v305_v47 }
  0xd6   : > { %v288_v51 = vpop.xlane.xlu1 %287  ;;  %v333_v57 = vsel %vm304_vm4, %v332_v48, %v328_v49  ;;  %v319_v60 = vsel %vm318_vm6, %v317_v52, %v312_v56 }
  0xd7   : > { %v286_v53 = vpop.xlane.xlu0 %285  ;;  %v342_v54 = vrot.slane %v288_v51, %v316_v44 }
  0xd8   : > { %v337_v55 = vrot.slane %v286_v53, %v309_v39 }
  0xda   : > { %v338_v58 = vsel %vm311_vm5, %v337_v55, %v333_v57 }
  0xdb   : > { %v343_v59 = vsel %vm318_vm6, %v342_v54, %v338_v58 }
  0xdc   : > { %v346_v61 = vsel %vm345_vm7, %v319_v60, %v343_v59 }
  0xdd   : > { %649 = vmatmul.mubr.msk.f32.vlgmr.msra.gmra.mrb[0].mxu0 %vm352_vm0, %v346_v61 }
 0x1b0   : > { %v425_v62 = vpop.f32.mrb[0].mxu0 }
 0x1b1   : > { %v429_v63 = vmax.f32 %v425_v62, 0.0  ;;  %v650_v0 = vpop.f32.mrb[1].mxu0 }
 0x1b3   : > { %660 = vmatmul.mubr.msk.f32.vlgmr.msra.gmra.mrb[0].mxu1 %vm430_vm2, %v429_v63 }
 0x286   : > { %v512_v1 = vpop.f32.mrb[0].mxu1 }
 0x287   : > { %v517_v2 = vrot.slane %v512_v1, 1  ;;  %v661_v3 = vpop.f32.mrb[1].mxu1 }
 0x289   : > { %v519_v4 = vadd.f32 %v517_v2, %v512_v1 }
 0x28b   : > { %v634_v5 = vmul.f32 -1.442695, %v519_v4 }
 0x28d   : > { %737 = vpow2.f32 %v634_v5 }
 0x297   : > { %v738_v6 = vpop.eup %737 }
 0x298   : > { %v523_v7 = vadd.f32 1.0, %v738_v6 }
 0x29a   : > { %739 = vrcp.f32 %v523_v7 }
 0x2a4   : > { %v740_v8 = vpop.eup %739 }
 0x2a5   : > { %527 = vst.msk [vmem:[%s203_s5] sm:$0x1] %vm526_vm8, %v740_v8 }
 0x2a6   : > { %784 = shalt.err (!%p781_p5)
}
 0x2a7   : > { %s785_s11 = scalar_lea.hbm %s1029_s21, 16  ;;  %s789_s23 = scalar_lea.hbm %s1081_s3, 32 }
 0x2a8   : > { %p786_p4 = scmp.ne.s32.totalorder %s1029_s21, %s785_s11  ;;  %p790_p12 = scmp.lt.u32.totalorder %s1029_s21, %s1081_s3 }
 0x2a9   : > { %p791_p1 = scmp.lt.u32.totalorder %s789_s23, %s785_s11  ;;  %p793_p8 = scmp.lt.u32.totalorder %s785_s11, %s1029_s21 }
 0x2aa   : > { %p787_p7 = pnand %p786_p4, %p1089_p9 }
 0x2ab   : > { %p792_p3 = por %p791_p1, %p790_p12 }
 0x2ac   : > { %p788_p10 = pneg %p787_p7 }
 0x2ad   : > { %p794_p11 = por %p793_p8, %p792_p3 }
 0x2af   : > { %p795_p0 = pnand %p794_p11, %p788_p10 }
 0x2b1   : > { %798 = shalt.err (!%p795_p0)
}
 0x2b2   : > { %672 = dma.vmem_to_hbm [thread:$0]  (%p1089_p9), %s1031_s7, 16, %s1029_s21, %s529_s24  }
 0x2b3 PF: > { %s553_s30 = sand.u32 1, %s833_s12   ;;  %p1090_p6 = scmp.ne.s32.totalorder %s1086_s27, 0 }
 0x2b4   : > { %p1091_p13 = scmp.ge.s32.totalorder %s853_s17, 2  ;;  %s554_s4 = scalar_lea.sflag [#allocation6], %s553_s30 }
 0x2b6   : > { %p679_p2 = pnand %p1091_p13, %p1090_p6 }
 0x2b8   : > { %828 = dma.done.wait (!%p679_p2), %s554_s4, 16  }
 0x2b9   : > { %830 = vsyncadd (!%p679_p2), %s554_s4, 4294967280  ;;  %s19_s17 = sadd.s32 1, %s853_s17   ;;  %s1092_s12 = smov %s837_s13 }
 0x2ba   : > { %p16_p5 = scmp.ge.s32.totalorder %s19_s17, 4   ;;  %s1093_s13 = smov %s841_s14 }
 0x2bb   : > { %s1094_s14 = smov %s938_s26  ;;  %s1095_s15 = smov %s849_s16 }
 0x2bc   : > { %s1096_s16 = smov %s1098_s20  ;;  %18 = sbr.rel (!%p16_p5) target bundleno = 6 (0x6), region = 85 }
 0x2c3   :  { %558 = vsyncpa [#allocation5], 1 }
 0x2c4   :  { %560 = vsyncpa [#allocation5 + $0x1], 1 }
 0x2c5   :  { %561 = vsyncpa [#allocation6], 1 }
 0x2c6   :  { %563 = vsyncpa [#allocation6 + $0x1], 1 }

</bundles_post_ra>
